<compile_context>
chip_gen: v6e
topology: v6e:2x2x1
jax: 0.10.0
libtpu: 0.0.40
codegen_flags: <defaults>
</compile_context>

<pallas_src>
import functools

import jax
import jax.numpy as jnp
from jax.experimental import pallas as pl
from jax.experimental.pallas import tpu as pltpu


# ---------------------------------------------------------------------------
# Fused kernel:  o = [x +] a_2 * (x - mean) / (std + eps) + b_2
#   * torch semantics: unbiased (N-1) std, eps added to std.
#   * sum(x) and sum(x*x) issued together -> single pass over the VMEM tile,
#     shorter per-tile critical path (no serialized second reduction).
#   * divide done as EUP approx reciprocal + one Newton step (keep the Newton
#     step: ~f32-exact, moves the divide off the VALU).
#   * a_2 / b_2 are pre-cast to f32 in the wrapper (no per-tile casts).
# ---------------------------------------------------------------------------
def _ln_kernel(x_ref, a_ref, b_ref, o_ref, *, eps, add_residual):
    x = x_ref[...].astype(jnp.float32)                       # (tm, H)
    h = x.shape[-1]
    s1 = jnp.sum(x, axis=-1, keepdims=True)                  # both reductions
    s2 = jnp.sum(x * x, axis=-1, keepdims=True)              # issued together
    mean = s1 * (1.0 / h)
    # unbiased variance (N-1); clamp tiny negative round-off
    var = jnp.maximum(s2 - s1 * mean, 0.0) * (1.0 / (h - 1))
    d = jnp.sqrt(var) + eps                                   # std + eps  (> 0)
    r = pl.reciprocal(d, approx=True)                         # EUP seed
    inv = r * (2.0 - d * r)                                   # Newton refine
    y = a_ref[...] * ((x - mean) * inv) + b_ref[...]          # (1,H) broadcast
    if add_residual:
        y = x + y
    o_ref[...] = y.astype(o_ref.dtype)


# ---------------------------------------------------------------------------
# Per-generation tiling policy
# ---------------------------------------------------------------------------
def _device_config():
    """Tile cap / min grid steps / scoped-VMEM override per TPU generation."""
    kind = ""
    try:
        kind = jax.devices()[0].device_kind.lower()
    except Exception:  # pragma: no cover - e.g. AOT on CPU
        pass
    if "v7" in kind:
        # 2 TensorCores, 64 MiB physical / 32 MiB scoped default, 3.2 TB/s HBM:
        # big tiles (6 MiB), just enough grid steps for both cores.
        return {"max_tile_bytes": 6 << 20, "min_grid_steps": 2,
                "vmem_limit": 30 << 20}
    if "v6" in kind:
        # 1 TensorCore: grid is a serial loop -> largest tile that fits.
        return {"max_tile_bytes": 6 << 20, "min_grid_steps": 1,
                "vmem_limit": 30 << 20}
    if "v5" in kind:
        # v5e scoped-VMEM default is 16 MiB: keep 4x double-buffered tiles
        # (~12 MiB) under it without overriding the limit.
        return {"max_tile_bytes": 3 << 20, "min_grid_steps": 1,
                "vmem_limit": None}
    # Unknown / future chip: conservative middle ground.
    return {"max_tile_bytes": 4 << 20, "min_grid_steps": 2, "vmem_limit": None}


def _tiling(rows, h, dtype):
    """Row-tile size (dtype-aware sublane multiple) + padded row count."""
    cfg = _device_config()
    itemsize = jnp.dtype(dtype).itemsize
    sub = max(8, 32 // itemsize)          # 8 (f32) / 16 (bf16) / 32 (int8/fp8)
    # largest tile under the byte cap, multiple of the native sublane height
    cap_rows = max(sub, (cfg["max_tile_bytes"] // (h * itemsize)) // sub * sub)
    # enough grid steps for the available TensorCores (1 on v5e/v6e, 2 on v7x)
    steps_rows = pl.cdiv(rows, cfg["min_grid_steps"])
    steps_rows = max(sub, pl.cdiv(steps_rows, sub) * sub)
    tm = max(sub, min(cap_rows, steps_rows))
    rows_padded = pl.cdiv(rows, tm) * tm  # pad instead of one giant block
    return tm, rows_padded, cfg


def _ln_call(x2d, a2d, b2d, *, eps, add_residual):
    rows, h = x2d.shape
    assert h > 1, "unbiased (N-1) std needs at least 2 features"
    tm, rows_padded, cfg = _tiling(rows, h, x2d.dtype)
    if rows_padded != rows:
        # Zero rows are harmless (std=0 -> finite output) and sliced away below.
        x2d = jnp.pad(x2d, ((0, rows_padded - rows), (0, 0)))

    kernel = functools.partial(_ln_kernel, eps=eps, add_residual=add_residual)
    cp_kwargs = dict(dimension_semantics=("parallel",))
    if cfg["vmem_limit"] is not None:
        cp_kwargs["vmem_limit_bytes"] = cfg["vmem_limit"]

    out = pl.pallas_call(
        kernel,
        out_shape=jax.ShapeDtypeStruct((rows_padded, h), x2d.dtype),
        grid_spec=pl.GridSpec(
            grid=(rows_padded // tm,),
            in_specs=[
                pl.BlockSpec((tm, h), lambda i: (i, 0)),     # x tile
                pl.BlockSpec((1, h), lambda i: (0, 0)),      # a_2 (constant)
                pl.BlockSpec((1, h), lambda i: (0, 0)),      # b_2 (constant)
            ],
            out_specs=pl.BlockSpec((tm, h), lambda i: (i, 0)),
        ),
        compiler_params=pltpu.CompilerParams(**cp_kwargs),
    )(x2d, a2d, b2d)

    if rows_padded != rows:
        out = out[:rows]
    return out


# ---------------------------------------------------------------------------
# Module-level wrappers (activations are (batch, seq, hidden))
# ---------------------------------------------------------------------------
def _prep(x, a_2, b_2):
    b, s, h = x.shape
    x2d = x.reshape(b * s, h)
    a2d = a_2.astype(jnp.float32).reshape(1, h)   # cast once, not per tile
    b2d = b_2.astype(jnp.float32).reshape(1, h)
    return x2d, a2d, b2d, (b, s, h)


def layer_norm(x, a_2, b_2, *, eps=1e-6):
    """LayerNorm.forward(x)  (torch-style: unbiased std, eps added to std)."""
    x2d, a2d, b2d, shape = _prep(x, a_2, b_2)
    return _ln_call(x2d, a2d, b2d, eps=eps, add_residual=False).reshape(shape)


def residual_layer_norm(x, a_2, b_2, *, eps=1e-6):
    """Fused sublayer connection with a LayerNorm sublayer: x + LayerNorm(x)."""
    x2d, a2d, b2d, shape = _prep(x, a_2, b_2)
    return _ln_call(x2d, a2d, b2d, eps=eps, add_residual=True).reshape(shape)


# ---------------------------------------------------------------------------
# Self-test
# ---------------------------------------------------------------------------
def _reference(x, a_2, b_2, eps):
    xr = x.astype(jnp.float32)
    h = x.shape[-1]
    mean = xr.mean(-1, keepdims=True)
    std = jnp.sqrt(((xr - mean) ** 2).sum(-1, keepdims=True) / (h - 1))
    ln = a_2 * (xr - mean) / (std + eps) + b_2
    return ln.astype(x.dtype)


if __name__ == "__main__":
    eps = 1e-6
    key = jax.random.PRNGKey(0)
    kx, ka, kb, kx2 = jax.random.split(key, 4)

    H = 128  # hidden on the 128-lane axis
    # LayerNorm params: module init is ones/zeros; perturb deterministically so
    # the numerical check is non-trivial (they are learnable parameters anyway).
    a_2 = 1.0 + 0.1 * jax.random.normal(ka, (H,), dtype=jnp.float32)
    b_2 = 0.1 * jax.random.normal(kb, (H,), dtype=jnp.float32)

    # Case 1: rows divisible by the sublane multiple (B*S = 16).
    x = jax.random.normal(kx, (2, 8, H), dtype=jnp.float32)
    ln_out = jax.block_until_ready(layer_norm(x, a_2, b_2, eps=eps))
    fused_out = jax.block_until_ready(residual_layer_norm(x, a_2, b_2, eps=eps))
    ln_ref = _reference(x, a_2, b_2, eps)
    assert jnp.allclose(ln_out, ln_ref, atol=1e-4, rtol=1e-4), "layer_norm mismatch"
    assert jnp.allclose(fused_out, x + ln_ref, atol=1e-4, rtol=1e-4), "fused mismatch"

    # Case 2: ragged row count (B*S = 15) exercises the row-padding path.
    x2 = jax.random.normal(kx2, (3, 5, H), dtype=jnp.float32)
    ln_out2 = jax.block_until_ready(layer_norm(x2, a_2, b_2, eps=eps))
    fused_out2 = jax.block_until_ready(residual_layer_norm(x2, a_2, b_2, eps=eps))
    ln_ref2 = _reference(x2, a_2, b_2, eps)
    assert jnp.allclose(ln_out2, ln_ref2, atol=1e-4, rtol=1e-4), "padded layer_norm mismatch"
    assert jnp.allclose(fused_out2, x2 + ln_ref2, atol=1e-4, rtol=1e-4), "padded fused mismatch"

    print("KERNEL_OK")
</pallas_src>

<mosaic_0001>
module attributes {stable_mosaic.version = 11 : i64} {
  func.func @_ln_kernel(%arg0: i32, %arg1: memref<8x128xf32, #tpu.memory_space<vmem>>, %arg2: memref<1x128xf32, #tpu.memory_space<vmem>>, %arg3: memref<1x128xf32, #tpu.memory_space<vmem>>, %arg4: memref<8x128xf32, #tpu.memory_space<vmem>>) attributes {dimension_semantics = [#tpu.dimension_semantics<parallel>], iteration_bounds = array<i64: 2>, scalar_prefetch = 0 : i64, scratch_operands = 0 : i64, tpu.core_type = #tpu.core_type<tc>, window_params = [{transform_indices = @transform_0, window_bounds = array<i64: 8, 128>}, {pipeline_mode = #tpu.pipeline_mode<synchronous>, transform_indices = @transform_1, window_bounds = array<i64: 1, 128>}, {pipeline_mode = #tpu.pipeline_mode<synchronous>, transform_indices = @transform_2, window_bounds = array<i64: 1, 128>}, {transform_indices = @transform_3, window_bounds = array<i64: 8, 128>}]} {
    %c0 = arith.constant 0 : index
    %c0_0 = arith.constant 0 : index
    %0 = vector.load %arg1[%c0, %c0_0] : memref<8x128xf32, #tpu.memory_space<vmem>>, vector<8x128xf32>
    %cst = arith.constant dense<0.000000e+00> : vector<8xf32>
    %1 = vector.multi_reduction <add>, %0, %cst [1] : vector<8x128xf32> to vector<8xf32>
    %2 = vector.shape_cast %1 : vector<8xf32> to vector<8x1xf32>
    %3 = arith.mulf %0, %0 : vector<8x128xf32>
    %cst_1 = arith.constant dense<0.000000e+00> : vector<8xf32>
    %4 = vector.multi_reduction <add>, %3, %cst_1 [1] : vector<8x128xf32> to vector<8xf32>
    %5 = vector.shape_cast %4 : vector<8xf32> to vector<8x1xf32>
    %cst_2 = arith.constant 7.812500e-03 : f32
    %6 = vector.broadcast %cst_2 : f32 to vector<8x1xf32>
    %7 = arith.mulf %2, %6 : vector<8x1xf32>
    %8 = arith.mulf %2, %7 : vector<8x1xf32>
    %9 = arith.subf %5, %8 : vector<8x1xf32>
    %cst_3 = arith.constant 0.000000e+00 : f32
    %10 = vector.broadcast %cst_3 : f32 to vector<8x1xf32>
    %11 = arith.maximumf %9, %10 : vector<8x1xf32>
    %cst_4 = arith.constant 0.00787401571 : f32
    %12 = vector.broadcast %cst_4 : f32 to vector<8x1xf32>
    %13 = arith.mulf %11, %12 : vector<8x1xf32>
    %14 = math.sqrt %13 : vector<8x1xf32>
    %cst_5 = arith.constant 9.99999997E-7 : f32
    %15 = vector.broadcast %cst_5 : f32 to vector<8x1xf32>
    %16 = arith.addf %14, %15 : vector<8x1xf32>
    %17 = tpu.reciprocal %16 {approx = true} : vector<8x1xf32> -> vector<8x1xf32>
    %18 = arith.mulf %16, %17 : vector<8x1xf32>
    %cst_6 = arith.constant 2.000000e+00 : f32
    %19 = vector.broadcast %cst_6 : f32 to vector<8x1xf32>
    %20 = arith.subf %19, %18 : vector<8x1xf32>
    %21 = arith.mulf %17, %20 : vector<8x1xf32>
    %c0_7 = arith.constant 0 : index
    %c0_8 = arith.constant 0 : index
    %22 = vector.load %arg2[%c0_7, %c0_8] : memref<1x128xf32, #tpu.memory_space<vmem>>, vector<1x128xf32>
    %23 = vector.broadcast %7 : vector<8x1xf32> to vector<8x128xf32>
    %24 = arith.subf %0, %23 : vector<8x128xf32>
    %25 = vector.broadcast %21 : vector<8x1xf32> to vector<8x128xf32>
    %26 = arith.mulf %24, %25 : vector<8x128xf32>
    %27 = vector.broadcast %22 : vector<1x128xf32> to vector<8x128xf32>
    %28 = arith.mulf %27, %26 : vector<8x128xf32>
    %c0_9 = arith.constant 0 : index
    %c0_10 = arith.constant 0 : index
    %29 = vector.load %arg3[%c0_9, %c0_10] : memref<1x128xf32, #tpu.memory_space<vmem>>, vector<1x128xf32>
    %30 = vector.broadcast %29 : vector<1x128xf32> to vector<8x128xf32>
    %31 = arith.addf %28, %30 : vector<8x128xf32>
    %c0_11 = arith.constant 0 : index
    %c0_12 = arith.constant 0 : index
    %32 = vector.load %arg4[%c0_11, %c0_12] : memref<8x128xf32, #tpu.memory_space<vmem>>, vector<8x128xf32>
    tpu.vector_store %arg4[%c0_11, %c0_12], %31 {strides = array<i32>} : memref<8x128xf32, #tpu.memory_space<vmem>>, vector<8x128xf32>,
    return
  }
  func.func @transform_0(%arg0: i32) -> (i32, i32) {
    %c0_i32 = arith.constant 0 : i32
    %c0_i32_0 = arith.constant 0 : i32
    return %arg0, %c0_i32 : i32, i32
  }
  func.func @transform_1(%arg0: i32) -> (i32, i32) {
    %c0_i32 = arith.constant 0 : i32
    %c0_i32_0 = arith.constant 0 : i32
    %c0_i32_1 = arith.constant 0 : i32
    return %c0_i32, %c0_i32_0 : i32, i32
  }
  func.func @transform_2(%arg0: i32) -> (i32, i32) {
    %c0_i32 = arith.constant 0 : i32
    %c0_i32_0 = arith.constant 0 : i32
    %c0_i32_1 = arith.constant 0 : i32
    return %c0_i32, %c0_i32_0 : i32, i32
  }
  func.func @transform_3(%arg0: i32) -> (i32, i32) {
    %c0_i32 = arith.constant 0 : i32
    %c0_i32_0 = arith.constant 0 : i32
    return %arg0, %c0_i32 : i32, i32
  }
}

</mosaic_0001>

<bundles_post_ra>
// kernel: tpu_custom_call.1
= control target key start
LH: loop header
LB: loop body
LE: loop exit
PB: predicated region body
PF: predicated region fallthrough
CT: control target
= control target key end

     0   :  { %8 = vsyncpa [#allocation3], 0  ;;  %s643_s0 = inlined_call_operand.hbm [shape: f32[16,128], index: 0, kind: input, shape index: {}]   ;;  %s644_s1 = inlined_call_operand.vmem [shape: f32[1,128], index: 1, kind: input, shape index: {}]   ;;  %s645_s2 = inlined_call_operand.vmem [shape: f32[1,128], index: 2, kind: input, shape index: {}]   ;;  %s646_s3 = inlined_call_operand.hbm [shape: f32[16,128], index: 3, kind: output, shape index: {}]  }
   0x1   :  { %10 = vsyncpa [#allocation3 + $0x1], 0 }
   0x2   :  { %11 = vsyncpa [#allocation4], 0 }
   0x3   :  { %13 = vsyncpa [#allocation4 + $0x1], 0  ;;  %s492_s12 = smov 0   ;;  %s494_s13 = smov 0  }
   0x4   :  { %s496_s14 = smov 0   ;;  %s498_s15 = smov 0  }
   0x5 LB: > { %s513_s16 = sadd.s32 4294967295, %s468_s15   ;;  %s312_s17 = sadd.s32 4294967294, %s468_s15   ;;  %s468_s15 = sphi %s498_s15, %s663_s15   ;;  %s464_s14 = sphi %s496_s14, %s662_s14   ;;  %s460_s13 = sphi %s494_s13, %s661_s13   ;;  %s456_s12 = sphi %s492_s12, %s660_s12  }
   0x6   : > { %s517_s18 = sadd.s32 1, %s468_s15   ;;  %s26_s19 = sadd.s32 1, %s464_s14 }
   0x7   : > { %s23_s20 = ssub.s32 %s468_s15, %s517_s18  ;;  %p33_p0 = scmp.ne.s32.totalorder %s464_s14, %s460_s13 }
   0x8   : > { %p24_p1 = scmp.eq.s32.totalorder %s23_s20, 0  ;;  %p34_p2 = scmp.eq.s32.totalorder %s468_s15, 0 }
   0x9   : > { %p39_p3 = scmp.ne.s32.totalorder %s460_s13, %s456_s12  ;;  %p40_p4 = scmp.eq.s32.totalorder %s513_s16, 0 }
   0xa   : > { %s529_s21 = scalar_select %p24_p1, %s464_s14, %s26_s19  }
   0xb   : > { %p531_p5 = por %p34_p2, %p33_p0  ;;  %p535_p6 = por %p40_p4, %p39_p3 }
   0xc   : > { %p105_p7 = scmp.eq.s32.totalorder %s513_s16, 1  ;;  %p111_p8 = scmp.eq.s32.totalorder %s312_s17, 1 }
   0xd   : > { %s650_s23 = scalar_select %p535_p6, 1, 0 }
   0xe   : > { %p338_p10 = scmp.lt.s32.totalorder %s468_s15, 2  ;;  %p542_p11 = por %p105_p7, %p33_p0 }
   0xf   : > { %p546_p12 = por %p111_p8, %p39_p3  ;;  %s137_s26 = sand.u32 1, %s464_s14  }
  0x10   : > { %s651_s24 = scalar_select %p542_p11, 1, 0 }
  0x11   : > { %s652_s25 = scalar_select %p546_p12, 1, 0 }
  0x12   : > { %s316_s27 = sshll.u32 %s468_s15, 7  ;;  %s315_s28 = sshll.u32 %s137_s26, 3 }
  0x13   : > { %s555_s4 = scalar_lea.hbm %s643_s0, %s316_s27  ;;  %s141_s5 = scalar_lea.vmem [#allocation2], %s315_s28 }
  0x14   : > { %s148_s6 = sshll.u32 %s141_s5, 4  ;;  %p559_p13 = pnand %p338_p10, %p531_p5  ;;  %s563_s6 = int_to_ptr.vmem [resolvable:$true] %s148_s6 }
  0x15   : > { %s138_s8 = scalar_lea.sflag [#allocation3], %s137_s26  ;;  %s376_s9 = scalar_lea.hbm %s555_s4, 128 }
  0x16   : > { %p377_p2 = scmp.ne.s32.totalorder %s555_s4, %s376_s9  ;;  %p378_p3 = pneg %p559_p13 }
  0x17   : > { %s381_s17 = scalar_lea.hbm %s643_s0, 256  ;;  %p382_p5 = scmp.lt.s32.totalorder %s555_s4, %s643_s0 }
  0x18   : > { %p379_p4 = pnand %p378_p3, %p377_p2  ;;  %p383_p8 = scmp.lt.s32.totalorder %s381_s17, %s376_s9 }
  0x1a   : > { %p380_p7 = pneg %p379_p4  ;;  %p384_p10 = por %p383_p8, %p382_p5 }
  0x1c   : > { %p385_p9 = pnand %p384_p10, %p380_p7 }
  0x1e   : > { %388 = shalt.err (!%p385_p9)
}
  0x1f   : > { %s389_s22 = scalar_lea.vmem %s563_s6, 128  ;;  %s470_s26 = smov [#allocation2]  }
  0x20   : > { %p390_p0 = scmp.ne.s32.totalorder %s563_s6, %s389_s22  ;;  %s394_s27 = sshll.u32 %s470_s26, 4  ;;  %s395_s27 = int_to_ptr.vmem [resolvable:$false] %s394_s27 }
  0x21   : > { %s396_s28 = scalar_lea.vmem %s395_s27, 256  ;;  %p397_p4 = scmp.lt.s32.totalorder %s563_s6, %s395_s27 }
  0x22   : > { %p392_p1 = pnand %p390_p0, %p378_p3  ;;  %p398_p12 = scmp.lt.s32.totalorder %s396_s28, %s389_s22 }
  0x24   : > { %p393_p2 = pneg %p392_p1  ;;  %p399_p11 = por %p398_p12, %p397_p4 }
  0x26   : > { %p400_p6 = pnand %p399_p11, %p393_p2 }
  0x28   : > { %403 = shalt.err (!%p400_p6)
}
  0x29   : > { %333 = dma.hbm_to_vmem [thread:$0]  (!%p559_p13), %s555_s4, 128, %s563_s6, %s138_s8  }
  0x2a   : > { %p654_p9 = scmp.lt.s32.totalorder %s468_s15, 3  ;;  %p655_p7 = scmp.ge.s32.totalorder %s468_s15, 1 }
  0x2c   : > { %p154_p0 = pnand %p655_p7, %p654_p9 }
  0x2d   : > { %s590_s29 = sand.u32 (!%p154_p0), 1, %s460_s13   ;;  %p656_p6 = scmp.ne.s32.totalorder (!%p154_p0), %s650_s23, 0 }
  0x2e   : > { %157 = sbr.rel (%p154_p0) target bundleno = 260 (0x104), region = 32  ;;  %s318_s30 = sshll.u32 (!%p154_p0), %s590_s29, 3 }
  0x2f   : > { %s160_s5 = scalar_lea.sflag (!%p154_p0), [#allocation3], %s590_s29  ;;  %s163_s7 = scalar_lea.vmem (!%p154_p0), [#allocation2], %s318_s30 }
  0x33   : > { %447 = dma.done.wait (%p656_p6), %s160_s5, 128  }
  0x34   : > { %449 = vsyncadd (%p656_p6), %s160_s5, 4294967168  ;;  %v186_v0 = vld [vmem:[%s163_s7] sm:$0xff]  ;;  %s323_s9 = sshll.u32 %s513_s16, 7  ;;  %s185_s10 = scalar_lea.vmem [#allocation5], %s318_s30 }
  0x35   : > { %187 = vadd.xlane.f32.xlu0 %v186_v0  ;;  %v189_v1 = vmul.f32 %v186_v0, %v186_v0  ;;  %v320_v20 = vld [vmem:[%s644_s1] ss:$0 sm:$0xff]  ;;  %s242_s11 = sshll.u32 %s185_s10, 4  ;;  %s240_s20 = scalar_lea.hbm %s646_s3, %s323_s9  ;;  %s243_s11 = int_to_ptr.vmem [resolvable:$true] %s242_s11 }
  0x36   : > { %v321_v22 = vld [vmem:[%s645_s2] ss:$0 sm:$0xff]  ;;  %s229_s22 = scalar_lea.sflag [#allocation4], %s590_s29  ;;  %s404_s26 = scalar_lea.vmem %s243_s11, 128 }
  0x37   : > { %p405_p11 = scmp.ne.s32.totalorder %s243_s11, %s404_s26  ;;  %p657_p12 = scmp.ne.s32.totalorder %s651_s24, 0 }
  0x38   : > { %s471_s27 = smov [#allocation5]  }
  0x39   : > { %190 = vadd.xlane.f32.xlu0 %v189_v1  ;;  %p406_p13 = pnand %p405_p11, %p657_p12  ;;  %s408_s28 = sshll.u32 %s471_s27, 4  ;;  %s409_s28 = int_to_ptr.vmem [resolvable:$false] %s408_s28 }
  0x3a   : > { %s410_s16 = scalar_lea.vmem %s409_s28, 256  ;;  %p411_p3 = scmp.lt.s32.totalorder %s243_s11, %s409_s28 }
  0x3b   : > { %p407_p1 = pneg %p406_p13  ;;  %p412_p5 = scmp.lt.s32.totalorder %s410_s16, %s404_s26 }
  0x3d   : > { %p413_p8 = por %p412_p5, %p411_p3 }
  0x3f   : > { %p414_p10 = pnand %p413_p8, %p407_p1 }
  0xbe   : > { %v188_v2 = vpop.xlane.xlu0 %187 }
  0xbf   : > { %v192_v3 = vmul.f32 0.0078125, %v188_v2 }
  0xc1   : > { %v193_v4 = vmul.f32 %v192_v3, %v188_v2  ;;  %v210_v18 = vsub.f32 %v186_v0, %v192_v3 }
  0xc2   : > { %v191_v5 = vpop.xlane.xlu0 %190 }
  0xc3   : > { %v194_v6 = vsub.f32 %v191_v5, %v193_v4 }
  0xc5   : > { %v195_v7 = vmax.f32 %v194_v6, 0.0 }
  0xc7   : > { %v196_v8 = vmul.f32 0.007874016, %v195_v7 }
  0xc9   : > { %372 = vrsqrt.f32 %v196_v8  ;;  %vm199_vm0 = vcmp.eq.f32.partialorder %v196_v8, inf  ;;  %v202_v11 = vand.u32 2147483648, %v196_v8  ;;  %vm201_vm1 = vcmp.eq.f32.partialorder %v196_v8, 0.0 }
  0xd6   : > { %v373_v9 = vpop.eup %372 }
  0xd7   : > { %v198_v10 = vmul.f32 %v373_v9, %v196_v8 }
  0xd9   : > { %v200_v12 = vsel %vm199_vm0, %v196_v8, %v198_v10 }
  0xda   : > { %v203_v13 = vsel %vm201_vm1, %v202_v11, %v200_v12 }
  0xdb   : > { %v204_v14 = vadd.f32 1e-06, %v203_v13 }
  0xdd   : > { %374 = vrcp.f32 %v204_v14 }
  0xea   : > { %v375_v15 = vpop.eup %374 }
  0xeb   : > { %v206_v16 = vmul.f32 %v375_v15, %v204_v14 }
  0xed   : > { %v207_v17 = vsub.f32 2.0, %v206_v16 }
  0xef   : > { %v208_v19 = vmul.f32 %v375_v15, %v207_v17 }
  0xf1   : > { %v211_v21 = vmul.f32 %v210_v18, %v208_v19 }
  0xf3   : > { %v218_v23 = vmul.f32 %v320_v20, %v211_v21 }
  0xf5   : > { %v226_v24 = vadd.f32 %v321_v22, %v218_v23 }
  0xf7   : > { %227 = vst [vmem:[%s185_s10] sm:$0xff] %v226_v24 }
  0xf8   : > { %417 = shalt.err (!%p414_p10)
}
  0xf9   : > { %s418_s30 = scalar_lea.hbm %s240_s20, 128  ;;  %s422_s7 = scalar_lea.hbm %s646_s3, 256 }
  0xfa   : > { %p419_p2 = scmp.ne.s32.totalorder %s240_s20, %s418_s30  ;;  %p423_p7 = scmp.lt.s32.totalorder %s240_s20, %s646_s3 }
  0xfb   : > { %p424_p0 = scmp.lt.s32.totalorder %s422_s7, %s418_s30 }
  0xfc   : > { %p420_p4 = pnand %p419_p2, %p657_p12 }
  0xfd   : > { %p425_p6 = por %p424_p0, %p423_p7 }
  0xfe   : > { %p421_p9 = pneg %p420_p4 }
 0x100   : > { %p426_p11 = pnand %p425_p6, %p421_p9 }
 0x102   : > { %429 = shalt.err (!%p426_p11)
}
 0x103   : > { %328 = dma.vmem_to_hbm [thread:$0]  (%p657_p12), %s243_s11, 128, %s240_s20, %s229_s22  }
 0x104 PF: > { %s254_s6 = sand.u32 1, %s456_s12   ;;  %p658_p13 = scmp.ne.s32.totalorder %s652_s25, 0 }
 0x105   : > { %p659_p1 = scmp.ge.s32.totalorder %s468_s15, 2  ;;  %s255_s8 = scalar_lea.sflag [#allocation4], %s254_s6 }
 0x107   : > { %p335_p3 = pnand %p659_p1, %p658_p13 }
 0x109   : > { %p336_p5 = pneg %p335_p3 }
 0x10b   : > { %451 = dma.done.wait (%p336_p5), %s255_s8, 128  }
 0x10c   : > { %453 = vsyncadd (%p336_p5), %s255_s8, 4294967168  ;;  %p16_p8 = scmp.ge.s32.totalorder %s517_s18, 4   ;;  %s660_s12 = smov %s460_s13 }
 0x10d   : > { %s661_s13 = smov %s464_s14  ;;  %s662_s14 = smov %s529_s21 }
 0x10e   : > { %s663_s15 = smov %s517_s18  ;;  %18 = sbr.rel (!%p16_p8) target bundleno = 5 (0x5), region = 77 }
 0x113   :  { %260 = vsyncpa [#allocation3], 1 }
 0x114   :  { %262 = vsyncpa [#allocation3 + $0x1], 1 }
 0x115   :  { %263 = vsyncpa [#allocation4], 1 }
 0x116   :  { %265 = vsyncpa [#allocation4 + $0x1], 1 }

</bundles_post_ra>
